<compile_context>
chip_gen: v5e
topology: v5e:2x2
jax: 0.10.0
libtpu: 0.0.40
codegen_flags: <defaults>
</compile_context>

<pallas_src>
import functools

import jax
import jax.numpy as jnp
from jax.experimental import pallas as pl
from jax.experimental.pallas import tpu as pltpu


def _cdiv(a, b):
    return -(-a // b)


def _round_up(x, m):
    return _cdiv(x, m) * m


def dqn_kernel(x_ref, w1_ref, b1_ref, w2_ref, b2_ref, w3_ref, b3_ref, out_ref):
    # fc1: cast activations to bf16 in-kernel; MXU matmul with f32 accumulation.
    x = x_ref[...].astype(jnp.bfloat16)
    h1 = jnp.dot(x, w1_ref[...], preferred_element_type=jnp.float32)
    h1 = jnp.maximum(h1 + b1_ref[...], 0.0)
    # fc2
    h2 = jnp.dot(h1.astype(jnp.bfloat16), w2_ref[...],
                 preferred_element_type=jnp.float32)
    h2 = jnp.maximum(h2 + b2_ref[...], 0.0)
    # fc3 (no activation); natural n_actions lanes, f32 store.
    out_ref[...] = (
        jnp.dot(h2.astype(jnp.bfloat16), w3_ref[...],
                preferred_element_type=jnp.float32)
        + b3_ref[...]
    )


def _vmem_budget_bytes():
    """Scoped-VMEM budget: ~3/4 of physical VMEM, capped at 96 MiB.
    -> ~48 MiB on v7x (64 MiB VMEM), 96 MiB on v5e/v6e (128 MiB VMEM)."""
    cap = 64 * 1024 * 1024
    try:
        cap = int(pltpu.get_tpu_info().vmem_capacity_bytes)
    except Exception:
        pass
    return min((cap * 3) // 4, 96 * 1024 * 1024)


def _choose_tile(B, d_in, d_h1, d_h2, d_out, tile_b_cap, vmem_budget):
    # Validate the caller-provided cap: multiple of 16 sublanes, >= 16.
    tile_b_cap = max(16, (int(tile_b_cap) // 16) * 16)

    # VMEM-aware row cap (f32 upper bound): double-buffered input + output
    # streams plus the two hidden f32 temporaries, after subtracting the
    # (double-buffered) resident weights and some headroom.
    weight_bytes = (2 * (d_in * d_h1 + d_h1 * d_h2 + d_h2 * d_out)
                    + 4 * (d_h1 + d_h2 + d_out))
    per_row_bytes = 4 * (2 * d_in + 2 * d_out + d_h1 + d_h2)
    avail = vmem_budget - 2 * weight_bytes - (4 << 20)
    row_cap = max(16, (avail // max(per_row_bytes, 1) // 16) * 16)
    tile_b_cap = min(tile_b_cap, row_cap)

    # Pick the number of tiles first, then the tile size -> padding is < 16
    # rows beyond cdiv, never ~2x.  Use >= 2 tiles when the batch is big
    # enough so ("parallel",) can split across v7x's two TensorCores.
    n_tiles = _cdiv(B, tile_b_cap)
    if n_tiles < 2 and B >= 32:
        n_tiles = 2
    tile_b = _round_up(_cdiv(B, n_tiles), 16)
    return tile_b, n_tiles


def prepare_params(params):
    """One-time parameter prep (call outside the hot path): weights -> bf16
    for the MXU, biases -> f32 row vectors.  No feature-dim padding."""
    def bias2d(b):
        return jnp.asarray(b, jnp.float32).reshape(1, -1)

    return {
        "w1": jnp.asarray(params["w1"], jnp.bfloat16),
        "b1": bias2d(params["b1"]),
        "w2": jnp.asarray(params["w2"], jnp.bfloat16),
        "b2": bias2d(params["b2"]),
        "w3": jnp.asarray(params["w3"], jnp.bfloat16),
        "b3": bias2d(params["b3"]),
    }


@functools.partial(jax.jit, static_argnames=("tile_b_cap",))
def dqn_forward(state, prepared, *, tile_b_cap=512):
    """state: [B, input_dims] float; prepared: output of prepare_params()."""
    B, d_in = state.shape
    d_h1 = prepared["w1"].shape[1]
    d_h2 = prepared["w2"].shape[1]
    d_out = prepared["w3"].shape[1]

    vmem_budget = _vmem_budget_bytes()
    tile_b, n_tiles = _choose_tile(B, d_in, d_h1, d_h2, d_out,
                                   tile_b_cap, vmem_budget)
    b_pad = tile_b * n_tiles

    x = state.astype(jnp.float32)
    if b_pad != B:
        x = jnp.pad(x, ((0, b_pad - B), (0, 0)))   # batch pad only (fused by jit)

    def resident(shape):  # weights/biases: same block every grid step (no re-DMA)
        return pl.BlockSpec(shape, lambda i: (0, 0))

    out_padded = pl.pallas_call(
        dqn_kernel,
        out_shape=jax.ShapeDtypeStruct((b_pad, d_out), jnp.float32),
        grid=(n_tiles,),
        in_specs=[
            pl.BlockSpec((tile_b, d_in), lambda i: (i, 0)),   # activation stream
            resident((d_in, d_h1)), resident((1, d_h1)),
            resident((d_h1, d_h2)), resident((1, d_h2)),
            resident((d_h2, d_out)), resident((1, d_out)),
        ],
        out_specs=pl.BlockSpec((tile_b, d_out), lambda i: (i, 0)),
        compiler_params=pltpu.CompilerParams(
            dimension_semantics=("parallel",),   # v7x: both TCs split the batch
            vmem_limit_bytes=vmem_budget,
        ),
    )(x, prepared["w1"], prepared["b1"], prepared["w2"], prepared["b2"],
      prepared["w3"], prepared["b3"])

    return out_padded[:B] if b_pad != B else out_padded


def init_params(key, input_dims, n_actions, fc1_dims=64, fc2_dims=64):
    """PyTorch nn.Linear default init: U(-1/sqrt(fan_in), 1/sqrt(fan_in))."""
    ks = jax.random.split(key, 6)

    def linear(kw, kb, fan_in, fan_out):
        bound = 1.0 / jnp.sqrt(fan_in)
        w = jax.random.uniform(kw, (fan_in, fan_out), jnp.float32, -bound, bound)
        b = jax.random.uniform(kb, (1, fan_out), jnp.float32, -bound, bound)
        return w, b

    w1, b1 = linear(ks[0], ks[1], input_dims, fc1_dims)
    w2, b2 = linear(ks[2], ks[3], fc1_dims, fc2_dims)
    w3, b3 = linear(ks[4], ks[5], fc2_dims, n_actions)
    return {"w1": w1, "b1": b1, "w2": w2, "b2": b2, "w3": w3, "b3": b3}


# TODO(synk): optim.Adam and nn.SmoothL1Loss are training-side machinery, not
# part of forward(), and are not translated to Pallas.

if __name__ == "__main__":
    key = jax.random.PRNGKey(0)
    k_state, k_params = jax.random.split(key)

    batch = 8
    input_dims = 16
    n_actions = 4

    state = jax.random.normal(k_state, (batch, input_dims), jnp.float32)
    params = init_params(k_params, input_dims, n_actions)
    prepared = prepare_params(params)   # one-time cast, outside the hot path

    out = jax.block_until_ready(dqn_forward(state, prepared))
    assert out.shape == (batch, n_actions)

    # Reference simulating the kernel's precision (bf16 MXU inputs, f32 accum).
    def ref_fwd(x, p):
        h = jnp.dot(x.astype(jnp.bfloat16), p["w1"].astype(jnp.bfloat16),
                    preferred_element_type=jnp.float32) + p["b1"]
        h = jnp.maximum(h, 0.0)
        h = jnp.dot(h.astype(jnp.bfloat16), p["w2"].astype(jnp.bfloat16),
                    preferred_element_type=jnp.float32) + p["b2"]
        h = jnp.maximum(h, 0.0)
        return jnp.dot(h.astype(jnp.bfloat16), p["w3"].astype(jnp.bfloat16),
                       preferred_element_type=jnp.float32) + p["b3"]

    ref_bf16 = ref_fwd(state, params)
    assert jnp.allclose(out, ref_bf16, atol=1e-2, rtol=1e-2), float(
        jnp.max(jnp.abs(out - ref_bf16)))

    # Loose sanity check against pure-f32 math (bf16 inputs cost ~1e-2 abs here).
    ref_f32 = state
    ref_f32 = jnp.maximum(ref_f32 @ params["w1"] + params["b1"], 0.0)
    ref_f32 = jnp.maximum(ref_f32 @ params["w2"] + params["b2"], 0.0)
    ref_f32 = ref_f32 @ params["w3"] + params["b3"]
    assert jnp.allclose(out, ref_f32, atol=5e-2, rtol=5e-2)

    print("KERNEL_OK")
</pallas_src>

<mosaic_0001>
module attributes {stable_mosaic.version = 11 : i64} {
  func.func @dqn_kernel(%arg0: i32, %arg1: memref<16x16xf32, #tpu.memory_space<vmem>>, %arg2: memref<16x64xbf16, #tpu.memory_space<vmem>>, %arg3: memref<1x64xf32, #tpu.memory_space<vmem>>, %arg4: memref<64x64xbf16, #tpu.memory_space<vmem>>, %arg5: memref<1x64xf32, #tpu.memory_space<vmem>>, %arg6: memref<64x4xbf16, #tpu.memory_space<vmem>>, %arg7: memref<1x4xf32, #tpu.memory_space<vmem>>, %arg8: memref<16x4xf32, #tpu.memory_space<vmem>>) attributes {dimension_semantics = [#tpu.dimension_semantics<parallel>], iteration_bounds = array<i64: 1>, scalar_prefetch = 0 : i64, scratch_operands = 0 : i64, tpu.core_type = #tpu.core_type<tc>, window_params = [{transform_indices = @transform_0, window_bounds = array<i64: 16, 16>}, {pipeline_mode = #tpu.pipeline_mode<synchronous>, transform_indices = @transform_1, window_bounds = array<i64: 16, 64>}, {pipeline_mode = #tpu.pipeline_mode<synchronous>, transform_indices = @transform_2, window_bounds = array<i64: 1, 64>}, {pipeline_mode = #tpu.pipeline_mode<synchronous>, transform_indices = @transform_3, window_bounds = array<i64: 64, 64>}, {pipeline_mode = #tpu.pipeline_mode<synchronous>, transform_indices = @transform_4, window_bounds = array<i64: 1, 64>}, {pipeline_mode = #tpu.pipeline_mode<synchronous>, transform_indices = @transform_5, window_bounds = array<i64: 64, 4>}, {pipeline_mode = #tpu.pipeline_mode<synchronous>, transform_indices = @transform_6, window_bounds = array<i64: 1, 4>}, {transform_indices = @transform_7, window_bounds = array<i64: 16, 4>}]} {
    %c0 = arith.constant 0 : index
    %c0_0 = arith.constant 0 : index
    %0 = vector.load %arg1[%c0, %c0_0] : memref<16x16xf32, #tpu.memory_space<vmem>>, vector<16x16xf32>
    %1 = arith.truncf %0 : vector<16x16xf32> to vector<16x16xbf16>
    %c0_1 = arith.constant 0 : index
    %c0_2 = arith.constant 0 : index
    %2 = vector.load %arg2[%c0_1, %c0_2] : memref<16x64xbf16, #tpu.memory_space<vmem>>, vector<16x64xbf16>
    %cst = arith.constant dense<0.000000e+00> : vector<16x64xf32>
    %3 = tpu.matmul %1, %2, %cst {dimension_numbers = #tpu.dot_dimension_numbers<[1], [0], [0], [1], [0, 0, 1, 1], [], []>} : vector<16x16xbf16>, vector<16x64xbf16>, vector<16x64xf32> -> vector<16x64xf32>
    %c0_3 = arith.constant 0 : index
    %c0_4 = arith.constant 0 : index
    %4 = vector.load %arg3[%c0_3, %c0_4] : memref<1x64xf32, #tpu.memory_space<vmem>>, vector<1x64xf32>
    %5 = vector.broadcast %4 : vector<1x64xf32> to vector<16x64xf32>
    %6 = arith.addf %3, %5 : vector<16x64xf32>
    %cst_5 = arith.constant 0.000000e+00 : f32
    %7 = vector.broadcast %cst_5 : f32 to vector<16x64xf32>
    %8 = arith.maximumf %6, %7 : vector<16x64xf32>
    %9 = arith.truncf %8 : vector<16x64xf32> to vector<16x64xbf16>
    %c0_6 = arith.constant 0 : index
    %c0_7 = arith.constant 0 : index
    %10 = vector.load %arg4[%c0_6, %c0_7] : memref<64x64xbf16, #tpu.memory_space<vmem>>, vector<64x64xbf16>
    %cst_8 = arith.constant dense<0.000000e+00> : vector<16x64xf32>
    %11 = tpu.matmul %9, %10, %cst_8 {dimension_numbers = #tpu.dot_dimension_numbers<[1], [0], [0], [1], [0, 0, 1, 1], [], []>} : vector<16x64xbf16>, vector<64x64xbf16>, vector<16x64xf32> -> vector<16x64xf32>
    %c0_9 = arith.constant 0 : index
    %c0_10 = arith.constant 0 : index
    %12 = vector.load %arg5[%c0_9, %c0_10] : memref<1x64xf32, #tpu.memory_space<vmem>>, vector<1x64xf32>
    %13 = vector.broadcast %12 : vector<1x64xf32> to vector<16x64xf32>
    %14 = arith.addf %11, %13 : vector<16x64xf32>
    %cst_11 = arith.constant 0.000000e+00 : f32
    %15 = vector.broadcast %cst_11 : f32 to vector<16x64xf32>
    %16 = arith.maximumf %14, %15 : vector<16x64xf32>
    %17 = arith.truncf %16 : vector<16x64xf32> to vector<16x64xbf16>
    %c0_12 = arith.constant 0 : index
    %c0_13 = arith.constant 0 : index
    %18 = vector.load %arg6[%c0_12, %c0_13] : memref<64x4xbf16, #tpu.memory_space<vmem>>, vector<64x4xbf16>
    %cst_14 = arith.constant dense<0.000000e+00> : vector<16x4xf32>
    %19 = tpu.matmul %17, %18, %cst_14 {dimension_numbers = #tpu.dot_dimension_numbers<[1], [0], [0], [1], [0, 0, 1, 1], [], []>} : vector<16x64xbf16>, vector<64x4xbf16>, vector<16x4xf32> -> vector<16x4xf32>
    %c0_15 = arith.constant 0 : index
    %c0_16 = arith.constant 0 : index
    %20 = vector.load %arg7[%c0_15, %c0_16] : memref<1x4xf32, #tpu.memory_space<vmem>>, vector<1x4xf32>
    %21 = vector.broadcast %20 : vector<1x4xf32> to vector<16x4xf32>
    %22 = arith.addf %19, %21 : vector<16x4xf32>
    %c0_17 = arith.constant 0 : index
    %c0_18 = arith.constant 0 : index
    %23 = vector.load %arg8[%c0_17, %c0_18] : memref<16x4xf32, #tpu.memory_space<vmem>>, vector<16x4xf32>
    tpu.vector_store %arg8[%c0_17, %c0_18], %22 {strides = array<i32>} : memref<16x4xf32, #tpu.memory_space<vmem>>, vector<16x4xf32>,
    return
  }
  func.func @transform_0(%arg0: i32) -> (i32, i32) {
    %c0_i32 = arith.constant 0 : i32
    %c0_i32_0 = arith.constant 0 : i32
    return %arg0, %c0_i32 : i32, i32
  }
  func.func @transform_1(%arg0: i32) -> (i32, i32) {
    %c0_i32 = arith.constant 0 : i32
    %c0_i32_0 = arith.constant 0 : i32
    %c0_i32_1 = arith.constant 0 : i32
    return %c0_i32, %c0_i32_0 : i32, i32
  }
  func.func @transform_2(%arg0: i32) -> (i32, i32) {
    %c0_i32 = arith.constant 0 : i32
    %c0_i32_0 = arith.constant 0 : i32
    %c0_i32_1 = arith.constant 0 : i32
    return %c0_i32, %c0_i32_0 : i32, i32
  }
  func.func @transform_3(%arg0: i32) -> (i32, i32) {
    %c0_i32 = arith.constant 0 : i32
    %c0_i32_0 = arith.constant 0 : i32
    %c0_i32_1 = arith.constant 0 : i32
    return %c0_i32, %c0_i32_0 : i32, i32
  }
  func.func @transform_4(%arg0: i32) -> (i32, i32) {
    %c0_i32 = arith.constant 0 : i32
    %c0_i32_0 = arith.constant 0 : i32
    %c0_i32_1 = arith.constant 0 : i32
    return %c0_i32, %c0_i32_0 : i32, i32
  }
  func.func @transform_5(%arg0: i32) -> (i32, i32) {
    %c0_i32 = arith.constant 0 : i32
    %c0_i32_0 = arith.constant 0 : i32
    %c0_i32_1 = arith.constant 0 : i32
    return %c0_i32, %c0_i32_0 : i32, i32
  }
  func.func @transform_6(%arg0: i32) -> (i32, i32) {
    %c0_i32 = arith.constant 0 : i32
    %c0_i32_0 = arith.constant 0 : i32
    %c0_i32_1 = arith.constant 0 : i32
    return %c0_i32, %c0_i32_0 : i32, i32
  }
  func.func @transform_7(%arg0: i32) -> (i32, i32) {
    %c0_i32 = arith.constant 0 : i32
    %c0_i32_0 = arith.constant 0 : i32
    return %arg0, %c0_i32 : i32, i32
  }
}

</mosaic_0001>

<bundles_post_ra>
// kernel: dqn_forward.1
= control target key start
LH: loop header
LB: loop body
LE: loop exit
PB: predicated region body
PF: predicated region fallthrough
CT: control target
= control target key end

     0   :  { %vm42_vm0 = vcmask 130048   ;;  %vm99_vm1 = vcmask 523264   ;;  %vm173_vm2 = vcmask 31744   ;;  %s321_s1 = inlined_call_operand.vmem [shape: bf16[16,64], index: 1, kind: input, shape index: {}]   ;;  %s322_s0 = inlined_call_operand.vmem [shape: f32[16,16], index: 0, kind: input, shape index: {}]   ;;  %s323_s2 = inlined_call_operand.vmem [shape: f32[1,64], index: 2, kind: input, shape index: {}]   ;;  %s324_s4 = inlined_call_operand.vmem [shape: f32[1,64], index: 4, kind: input, shape index: {}]   ;;  %s325_s3 = inlined_call_operand.vmem [shape: bf16[64,64], index: 3, kind: input, shape index: {}]   ;;  %s326_s6 = inlined_call_operand.vmem [shape: f32[1,4], index: 6, kind: input, shape index: {}]   ;;  %s327_s5 = inlined_call_operand.vmem [shape: bf16[64,4], index: 5, kind: input, shape index: {}]   ;;  %s328_s7 = inlined_call_operand.vmem [shape: f32[16,4], index: 7, kind: output, shape index: {}]  }
   0x1   :  { %v219_v0 = vld [vmem:[%s321_s1] sm:$0xff]  ;;  %v28_v2 = vld [vmem:[%s322_s0 + $0x8] sm:$0xff]  ;;  %v223_v4 = vld [vmem:[%s325_s3 + $0x18] sm:$0xff] }
   0x2   :  { %v27_v1 = vld [vmem:[%s322_s0] sm:$0xff]  ;;  %53 = vmatpush.bf16.msra.mxu0 %v219_v0  ;;  %107 = vmatpush.bf16.msra.mxu1 %v223_v4  ;;  %v222_v5 = vld [vmem:[%s325_s3 + $0x10] sm:$0xff]  ;;  %v221_v6 = vld [vmem:[%s325_s3 + $0x8] sm:$0xff] }
   0x3   :  { %v29_v3 = vpack.c.bf16 %v28_v2, %v27_v1  ;;  %v220_v7 = vld [vmem:[%s325_s3] sm:$0xff]  ;;  %v227_v16 = vld [vmem:[%s327_s5 + $0x18] sm:$0xff]  ;;  %v226_v17 = vld [vmem:[%s327_s5 + $0x10] sm:$0xff] }
   0x4   :  { %v228_v9 = vld [vmem:[%s323_s2] ss:$0 sm:$0xff]  ;;  %163 = vmatpush.bf16.msra.mxu2 %v227_v16  ;;  %v225_v18 = vld [vmem:[%s327_s5 + $0x8] sm:$0xff] }
   0x5   :  { %184 = vmatmul.msk.bf16.vlgmr.msra.gmra.mxu0 %vm42_vm0, %v29_v3  ;;  %v224_v19 = vld [vmem:[%s327_s5] sm:$0xff] }
   0x6   :  { %108 = vmatpush.bf16.msra.mxu1 %v222_v5  ;;  %v229_v21 = vld [vmem:[%s324_s4] ss:$0 sm:$0xff] }
   0x7   :  { %v230_v28 = vld [vmem:[%s326_s6] ss:$0 sm:$0xff] }
   0x8   :  { %164 = vmatpush.bf16.msra.mxu2 %v226_v17 }
   0xa   :  { %109 = vmatpush.bf16.msra.mxu1 %v221_v6 }
   0xc   :  { %165 = vmatpush.bf16.msra.mxu2 %v225_v18 }
   0xe   :  { %110 = vmatpush.bf16.msra.mxu1 %v220_v7 }
  0x10   :  { %166 = vmatpush.bf16.msra.mxu2 %v224_v19 }
  0x82   :  { %v55_v8 = vpop.f32.mrf.mxu0 }
  0x83   :  { %v56_v10 = vadd.f32 %v228_v9, %v55_v8 }
  0x85   :  { %v60_v13 = vmax.f32 %v56_v10, 0.0 }
  0x8a   :  { %v57_v11 = vpop.f32.mrf.mxu0 }
  0x8b   :  { %v58_v12 = vadd.f32 %v228_v9, %v57_v11 }
  0x8d   :  { %v61_v14 = vmax.f32 %v58_v12, 0.0 }
  0x8f   :  { %v62_v15 = vpack.c.bf16 %v61_v14, %v60_v13 }
  0x91   :  { %201 = vmatmul.msk.bf16.vlgmr.msra.gmra.mxu1 %vm99_vm1, %v62_v15 }
 0x10e   :  { %v112_v20 = vpop.f32.mrf.mxu1 }
 0x10f   :  { %v113_v22 = vadd.f32 %v229_v21, %v112_v20 }
 0x111   :  { %v117_v25 = vmax.f32 %v113_v22, 0.0 }
 0x116   :  { %v114_v23 = vpop.f32.mrf.mxu1 }
 0x117   :  { %v115_v24 = vadd.f32 %v229_v21, %v114_v23 }
 0x119   :  { %v118_v26 = vmax.f32 %v115_v24, 0.0 }
 0x11b   :  { %v119_v27 = vpack.c.bf16 %v118_v26, %v117_v25 }
 0x11d   :  { %218 = vmatmul.msk.bf16.vlgmr.msra.gmra.mxu2 %vm99_vm1, %v119_v27 }
 0x1a0   :  { %v168_v29 = vpop.f32.mrf.mxu2 }
 0x1a1   :  { %v169_v30 = vadd.f32 %v230_v28, %v168_v29 }
 0x1a3   :  { %174 = vst.msk [vmem:[%s328_s7] sm:$0xff] %vm173_vm2, %v169_v30 }
 0x1a8   :  { %v170_v31 = vpop.f32.mrf.mxu2 }
 0x1a9   :  { %v171_v32 = vadd.f32 %v230_v28, %v170_v31 }
 0x1ab   :  { %175 = vst.msk [vmem:[%s328_s7 + $0x8] sm:$0xff] %vm173_vm2, %v171_v32 }

</bundles_post_ra>
